<compile_context>
chip_gen: v5e
topology: v5e:2x2
jax: 0.10.0
libtpu: 0.0.40
codegen_flags: <defaults>
</compile_context>

<pallas_src>
import functools
import math

import jax
import jax.numpy as jnp
from jax.experimental import pallas as pl
from jax.experimental.pallas import tpu as pltpu


# ---------------------------------------------------------------------------
# Dropout mask: stateless integer hash keyed on (seed, global element index).
# Pure jnp (lowers on TPU and in interpret mode) and tiling-independent, so the
# pure-JAX reference reproduces the exact same mask.  Trimmed to a single
# multiply-xorshift round (the hash was the VALU-critical path at small D).
# ---------------------------------------------------------------------------
_GOLDEN = 0x9E3779B9
_MIX = 0x85EBCA6B


def _keep_threshold(p):
    # drop with probability p  <=>  keep iff bits >= p * 2^32 (integer compare)
    return jnp.uint32(min(int(round(p * 4294967296.0)), 4294967295))


def _hash_keep_mask(idx_u32, salt_u32, threshold_u32):
    x = idx_u32 + salt_u32
    x = x ^ (x >> 16)
    x = x * jnp.uint32(_MIX)
    x = x ^ (x >> 13)
    return x >= threshold_u32


def _apply_dropout(h, p, row0_u32, col0_u32, seed_u32, d_ff):
    # TODO(synk): PyTorch's dropout RNG stream cannot be reproduced bit-exactly;
    # a stateless per-element hash keyed on (seed, global index) is used instead.
    tm, tf = h.shape
    # Loop-invariant local index pattern; tile origin + seed folded into a
    # single scalar salt (one vector add per step instead of per-step row/col
    # iota + multiply chains).
    pattern = (jax.lax.broadcasted_iota(jnp.int32, (tm, tf), 0) * d_ff
               + jax.lax.broadcasted_iota(jnp.int32, (tm, tf), 1)).astype(jnp.uint32)
    salt = (row0_u32 * jnp.uint32(d_ff) + col0_u32
            + seed_u32 * jnp.uint32(_GOLDEN))
    keep = _hash_keep_mask(pattern, salt, _keep_threshold(p))
    return jnp.where(keep, h * jnp.float32(1.0 / (1.0 - p)), jnp.float32(0.0))


# ---------------------------------------------------------------------------
# Kernel 1: resident-weights fast path (W1/W2/b1/b2 stay in VMEM, grid = rows)
# ---------------------------------------------------------------------------
def _ffn_resident_kernel(seed_ref, x_ref, w1_ref, b1_ref, w2_ref, b2_ref,
                         o_ref, *, p):
    h = jnp.dot(x_ref[...], w1_ref[...], preferred_element_type=jnp.float32)
    h = jnp.maximum(h + b1_ref[...], 0.0)
    if p >= 1.0:
        h = jnp.zeros_like(h)
    elif p > 0.0:
        tm, d_ff = h.shape
        row0 = (pl.program_id(0) * tm).astype(jnp.uint32)
        h = _apply_dropout(h, p, row0, jnp.uint32(0),
                           seed_ref[0].astype(jnp.uint32), d_ff)
    out = jnp.dot(h.astype(w2_ref.dtype), w2_ref[...],
                  preferred_element_type=jnp.float32)
    o_ref[...] = (out + b2_ref[...]).astype(o_ref.dtype)


# ---------------------------------------------------------------------------
# Kernel 2: tiled-d_ff fallback (f32 accumulator, reduction axis last)
# ---------------------------------------------------------------------------
def _ffn_tiled_kernel(seed_ref, x_ref, w1_ref, b1_ref, w2_ref, b2_ref,
                      o_ref, acc_ref, *, p, d_ff, tf):
    j = pl.program_id(1)

    @pl.when(j == 0)
    def _init():
        acc_ref[...] = jnp.zeros_like(acc_ref)

    # linear_1 (full d_model contraction, one d_ff tile) + bias + relu.
    h = jnp.dot(x_ref[...], w1_ref[...], preferred_element_type=jnp.float32)
    b1_tile = b1_ref[:, pl.ds(pl.multiple_of(j * tf, tf), tf)]   # resident b1
    h = jnp.maximum(h + b1_tile, 0.0)

    if p >= 1.0:
        h = jnp.zeros_like(h)
    elif p > 0.0:
        tm = h.shape[0]
        row0 = (pl.program_id(0) * tm).astype(jnp.uint32)
        col0 = (j * tf).astype(jnp.uint32)
        h = _apply_dropout(h, p, row0, col0,
                           seed_ref[0].astype(jnp.uint32), d_ff)

    # linear_2 partial sum over this d_ff tile into the f32 accumulator.
    acc_ref[...] += jnp.dot(h.astype(w2_ref.dtype), w2_ref[...],
                            preferred_element_type=jnp.float32)

    @pl.when(j == pl.num_programs(1) - 1)
    def _finalize():
        o_ref[...] = (acc_ref[...] + b2_ref[...]).astype(o_ref.dtype)


# ---------------------------------------------------------------------------
# Sizing helpers
# ---------------------------------------------------------------------------
def _nbytes(shape, dtype):
    return math.prod(shape) * jnp.dtype(dtype).itemsize


def _round_up(x, m):
    return -(-x // m) * m


def _pick_tile(dim, target, quantum):
    """Largest multiple of `quantum` <= target that divides `dim` (falls back
    to the full dim if nothing divides)."""
    if dim <= target:
        return dim
    t = (min(target, dim) // quantum) * quantum
    while t >= quantum:
        if dim % t == 0:
            return t
        t -= quantum
    return dim


def _vmem_budget_bytes():
    """~75% of physical VMEM (48 MiB on v7x, 96 MiB on v5e/v6e); conservative
    48 MiB fallback if the hardware query is unavailable."""
    cap = 64 * 1024 * 1024
    try:
        info = pltpu.get_tpu_info()
        cap = int(getattr(info, "vmem_capacity_bytes", cap) or cap)
    except Exception:
        pass
    return int(cap * 3 // 4)


# ---------------------------------------------------------------------------
# Public wrapper
# ---------------------------------------------------------------------------
def feed_forward_block(x, w1, b1, w2, b2, *, dropout_p=0.0, seed=0,
                       training=False, block_m=1024, block_f=512,
                       _force_tiled=False):
    """Fused FeedForwardBlock forward pass.

    x: [B, S, D]; w1: [D, F]; b1: [F]; w2: [F, D]; b2: [D].
    Pass x/w1/w2 in bfloat16 for native MXU throughput; bias adds, relu,
    dropout and matmul accumulation are performed in float32.
    """
    B, S, D = x.shape
    F = w1.shape[1]
    M = B * S
    p = float(dropout_p) if training else 0.0

    budget = _vmem_budget_bytes()
    # dtype-aware sublane quantum: 8 rows for f32, 16 for bf16, 32 for int8/fp8
    qm = max(8, 32 // jnp.dtype(x.dtype).itemsize)

    x2 = x.reshape(M, D)
    b1r = b1.reshape(1, F).astype(jnp.float32)
    b2r = b2.reshape(1, D).astype(jnp.float32)
    seed_arr = jnp.asarray([seed], dtype=jnp.int32)

    cost = pl.CostEstimate(
        flops=4 * M * D * F,
        transcendentals=0,
        bytes_accessed=(2 * _nbytes((M, D), x.dtype)
                        + _nbytes((D, F), w1.dtype) + _nbytes((F, D), w2.dtype)
                        + _nbytes((F,), jnp.float32) + _nbytes((D,), jnp.float32)),
    )

    # ---------------- resident-weights fast path ----------------------------
    def est_resident(tm_):
        est = 2 * (_nbytes((D, F), w1.dtype) + _nbytes((F, D), w2.dtype))
        est += 2 * (_nbytes((1, F), jnp.float32) + _nbytes((1, D), jnp.float32))
        est += 4 * _nbytes((tm_, D), x.dtype)            # x-in + out, double-buffered
        est += _nbytes((tm_, F), jnp.float32)            # f32 hidden tile
        if 0.0 < p < 1.0:
            est += 2 * _nbytes((tm_, F), jnp.float32)    # dropout temporaries
        return est

    tm = min(_round_up(block_m, qm), _round_up(M, qm))
    while tm > qm and est_resident(tm) > budget:
        tm = max(qm, _round_up(tm // 2, qm))
    use_resident = (not _force_tiled) and est_resident(tm) <= budget

    if use_resident:
        # Keep >= 2 row tiles so the "parallel" row axis can shard across the
        # two TensorCores of a v7x chip (weights are constant-indexed, so the
        # extra grid step does not add weight DMA traffic).
        if M > qm and _round_up(M, tm) // tm < 2:
            tm = max(qm, _round_up((M + 1) // 2, qm))
        M_pad = _round_up(M, tm)
        x2p = x2 if M_pad == M else jnp.pad(x2, ((0, M_pad - M), (0, 0)))
        out = pl.pallas_call(
            functools.partial(_ffn_resident_kernel, p=p),
            out_shape=jax.ShapeDtypeStruct((M_pad, D), x.dtype),
            grid=(M_pad // tm,),
            in_specs=[
                pl.BlockSpec(memory_space=pltpu.MemorySpace.SMEM),   # seed (1,)
                pl.BlockSpec((tm, D), lambda i: (i, 0)),             # x row tile
                pl.BlockSpec((D, F), lambda i: (0, 0)),              # W1 resident
                pl.BlockSpec((1, F), lambda i: (0, 0)),              # b1 resident
                pl.BlockSpec((F, D), lambda i: (0, 0)),              # W2 resident
                pl.BlockSpec((1, D), lambda i: (0, 0)),              # b2 resident
            ],
            out_specs=pl.BlockSpec((tm, D), lambda i: (i, 0)),
            compiler_params=pltpu.CompilerParams(
                dimension_semantics=("parallel",),
                vmem_limit_bytes=budget,
            ),
            cost_estimate=cost,
        )(seed_arr, x2p, w1, b1r, w2, b2r)
    else:
        # ---------------- tiled-d_ff fallback (large weights) ---------------
        qf = 256 if (F % 256 == 0 and block_f >= 256) else 128   # MXU-width tiles
        can_tile_f = (F % qf == 0)
        # TODO(synk): ragged F (not a multiple of 128) falls back to tf == F.
        tf = _pick_tile(F, max(block_f, qf), qf) if can_tile_f else F
        tm = min(_round_up(block_m, qm), _round_up(M, qm))

        def est_tiled(tm_, tf_):
            est = 2 * (_nbytes((tm_, D), x.dtype) + _nbytes((D, tf_), w1.dtype)
                       + _nbytes((tf_, D), w2.dtype))
            est += 2 * (_nbytes((1, F), jnp.float32) + _nbytes((1, D), jnp.float32))
            est += 2 * _nbytes((tm_, D), x.dtype)            # out, double-buffered
            est += _nbytes((tm_, D), jnp.float32)            # f32 accumulator
            est += _nbytes((tm_, tf_), jnp.float32)          # f32 hidden tile
            if 0.0 < p < 1.0:
                est += 2 * _nbytes((tm_, tf_), jnp.float32)  # dropout temporaries
            return est

        while est_tiled(tm, tf) > budget:
            if tm > qm:
                tm = max(qm, _round_up(tm // 2, qm))
            elif can_tile_f and tf > qf:
                tf = _pick_tile(F, max(qf, tf // 2), qf)
            else:
                break   # best effort; rely on the compiler vmem limit

        M_pad = _round_up(M, tm)
        x2p = x2 if M_pad == M else jnp.pad(x2, ((0, M_pad - M), (0, 0)))
        out = pl.pallas_call(
            functools.partial(_ffn_tiled_kernel, p=p, d_ff=F, tf=tf),
            out_shape=jax.ShapeDtypeStruct((M_pad, D), x.dtype),
            grid=(M_pad // tm, F // tf),
            in_specs=[
                pl.BlockSpec(memory_space=pltpu.MemorySpace.SMEM),   # seed (1,)
                pl.BlockSpec((tm, D), lambda i, j: (i, 0)),          # x row tile
                pl.BlockSpec((D, tf), lambda i, j: (0, j)),          # W1 col tile
                pl.BlockSpec((1, F), lambda i, j: (0, 0)),           # b1 resident
                pl.BlockSpec((tf, D), lambda i, j: (j, 0)),          # W2 row tile
                pl.BlockSpec((1, D), lambda i, j: (0, 0)),           # b2 resident
            ],
            out_specs=pl.BlockSpec((tm, D), lambda i, j: (i, 0)),
            scratch_shapes=[pltpu.VMEM((tm, D), jnp.float32)],
            compiler_params=pltpu.CompilerParams(
                dimension_semantics=("parallel", "arbitrary"),
                vmem_limit_bytes=budget,
            ),
            cost_estimate=cost,
        )(seed_arr, x2p, w1, b1r, w2, b2r)

    if out.shape[0] != M:
        out = out[:M]
    return out.reshape(B, S, D)


# ---------------------------------------------------------------------------
# Pure-JAX reference (mirrors the kernel's dtype casts and dropout hash).
# ---------------------------------------------------------------------------
def ref_forward(x, w1, b1, w2, b2, *, dropout_p, seed, training):
    B, S, D = x.shape
    F = w1.shape[1]
    M = B * S
    xf = x.reshape(M, D).astype(jnp.float32)
    h = xf @ w1.astype(jnp.float32) + b1.astype(jnp.float32)
    h = jnp.maximum(h, 0.0)
    p = float(dropout_p) if training else 0.0
    if p >= 1.0:
        h = jnp.zeros_like(h)
    elif p > 0.0:
        row = jnp.arange(M, dtype=jnp.int32)[:, None].astype(jnp.uint32)
        col = jnp.arange(F, dtype=jnp.int32)[None, :].astype(jnp.uint32)
        idx = row * jnp.uint32(F) + col
        salt = jnp.uint32(seed) * jnp.uint32(_GOLDEN)
        keep = _hash_keep_mask(idx, salt, _keep_threshold(p))
        h = jnp.where(keep, h * (1.0 / (1.0 - p)), 0.0)
    h = h.astype(w2.dtype).astype(jnp.float32)    # mirror in-kernel MXU cast
    out = h @ w2.astype(jnp.float32) + b2.astype(jnp.float32)
    return out.reshape(B, S, D).astype(x.dtype)


if __name__ == "__main__":
    # Small, lane-aligned shapes: d_model=128, d_ff=256, batch=2, seq=64.
    B, S, D, F = 2, 64, 128, 256
    key = jax.random.PRNGKey(0)
    kx, k1, kb1, k2, kb2 = jax.random.split(key, 5)

    # bf16 activations/weights feed the MXU natively; f32 biases.
    x = jax.random.normal(kx, (B, S, D), jnp.float32).astype(jnp.bfloat16)
    w1 = (jax.random.normal(k1, (D, F), jnp.float32) / math.sqrt(D)).astype(jnp.bfloat16)
    b1 = jax.random.normal(kb1, (F,), jnp.float32) * 0.01
    w2 = (jax.random.normal(k2, (F, D), jnp.float32) / math.sqrt(F)).astype(jnp.bfloat16)
    b2 = jax.random.normal(kb2, (D,), jnp.float32) * 0.01

    def check(out, ref, atol=1e-2, rtol=2e-2):
        o = out.astype(jnp.float32)
        r = ref.astype(jnp.float32)
        err = float(jnp.max(jnp.abs(o - r)))
        assert jnp.allclose(o, r, atol=atol, rtol=rtol), err

    # 1) Eval mode (dropout disabled), resident-weights fast path.
    out_eval = jax.block_until_ready(
        feed_forward_block(x, w1, b1, w2, b2, dropout_p=0.1, seed=42,
                           training=False))
    check(out_eval, ref_forward(x, w1, b1, w2, b2, dropout_p=0.1, seed=42,
                                training=False))

    # 2) Training mode (fused in-kernel dropout), resident-weights fast path.
    ref_train = ref_forward(x, w1, b1, w2, b2, dropout_p=0.1, seed=42,
                            training=True)
    out_train = jax.block_until_ready(
        feed_forward_block(x, w1, b1, w2, b2, dropout_p=0.1, seed=42,
                           training=True))
    assert out_train.shape == (B, S, D)
    check(out_train, ref_train)

    # 3) Training mode through the tiled-d_ff fallback path on a (2, 2) grid
    #    (exercises the f32 accumulator + pl.when init/finalize + resident b1
    #    slicing), compared against the same reference.
    out_tiled = jax.block_until_ready(
        feed_forward_block(x, w1, b1, w2, b2, dropout_p=0.1, seed=42,
                           training=True, block_m=64, block_f=128,
                           _force_tiled=True))
    check(out_tiled, ref_train)

    print("KERNEL_OK")
</pallas_src>

<mosaic_0001>
module attributes {stable_mosaic.version = 11 : i64} {
  func.func @_ffn_resident_kernel(%arg0: i32, %arg1: memref<1xi32, #tpu.memory_space<smem>>, %arg2: memref<64x128xbf16, #tpu.memory_space<vmem>>, %arg3: memref<128x256xbf16, #tpu.memory_space<vmem>>, %arg4: memref<1x256xf32, #tpu.memory_space<vmem>>, %arg5: memref<256x128xbf16, #tpu.memory_space<vmem>>, %arg6: memref<1x128xf32, #tpu.memory_space<vmem>>, %arg7: memref<64x128xbf16, #tpu.memory_space<vmem>>) attributes {dimension_semantics = [#tpu.dimension_semantics<parallel>], iteration_bounds = array<i64: 2>, scalar_prefetch = 0 : i64, scratch_operands = 0 : i64, tpu.core_type = #tpu.core_type<tc>, window_params = [{transform_indices = @transform_0, window_bounds = array<i64: 1>}, {transform_indices = @transform_1, window_bounds = array<i64: 64, 128>}, {pipeline_mode = #tpu.pipeline_mode<synchronous>, transform_indices = @transform_2, window_bounds = array<i64: 128, 256>}, {pipeline_mode = #tpu.pipeline_mode<synchronous>, transform_indices = @transform_3, window_bounds = array<i64: 1, 256>}, {pipeline_mode = #tpu.pipeline_mode<synchronous>, transform_indices = @transform_4, window_bounds = array<i64: 256, 128>}, {pipeline_mode = #tpu.pipeline_mode<synchronous>, transform_indices = @transform_5, window_bounds = array<i64: 1, 128>}, {transform_indices = @transform_6, window_bounds = array<i64: 64, 128>}]} {
    %c0 = arith.constant 0 : index
    %c0_0 = arith.constant 0 : index
    %0 = vector.load %arg2[%c0, %c0_0] : memref<64x128xbf16, #tpu.memory_space<vmem>>, vector<64x128xbf16>
    %c0_1 = arith.constant 0 : index
    %c0_2 = arith.constant 0 : index
    %1 = vector.load %arg3[%c0_1, %c0_2] : memref<128x256xbf16, #tpu.memory_space<vmem>>, vector<128x256xbf16>
    %cst = arith.constant dense<0.000000e+00> : vector<64x256xf32>
    %2 = tpu.matmul %0, %1, %cst {dimension_numbers = #tpu.dot_dimension_numbers<[1], [0], [0], [1], [0, 0, 1, 1], [], []>} : vector<64x128xbf16>, vector<128x256xbf16>, vector<64x256xf32> -> vector<64x256xf32>
    %c0_3 = arith.constant 0 : index
    %c0_4 = arith.constant 0 : index
    %3 = vector.load %arg4[%c0_3, %c0_4] : memref<1x256xf32, #tpu.memory_space<vmem>>, vector<1x256xf32>
    %4 = vector.broadcast %3 : vector<1x256xf32> to vector<64x256xf32>
    %5 = arith.addf %2, %4 : vector<64x256xf32>
    %cst_5 = arith.constant 0.000000e+00 : f32
    %6 = vector.broadcast %cst_5 : f32 to vector<64x256xf32>
    %7 = arith.maximumf %5, %6 : vector<64x256xf32>
    %8 = arith.truncf %7 : vector<64x256xf32> to vector<64x256xbf16>
    %c0_6 = arith.constant 0 : index
    %c0_7 = arith.constant 0 : index
    %9 = vector.load %arg5[%c0_6, %c0_7] : memref<256x128xbf16, #tpu.memory_space<vmem>>, vector<256x128xbf16>
    %cst_8 = arith.constant dense<0.000000e+00> : vector<64x128xf32>
    %10 = tpu.matmul %8, %9, %cst_8 {dimension_numbers = #tpu.dot_dimension_numbers<[1], [0], [0], [1], [0, 0, 1, 1], [], []>} : vector<64x256xbf16>, vector<256x128xbf16>, vector<64x128xf32> -> vector<64x128xf32>
    %c0_9 = arith.constant 0 : index
    %c0_10 = arith.constant 0 : index
    %11 = vector.load %arg6[%c0_9, %c0_10] : memref<1x128xf32, #tpu.memory_space<vmem>>, vector<1x128xf32>
    %12 = vector.broadcast %11 : vector<1x128xf32> to vector<64x128xf32>
    %13 = arith.addf %10, %12 : vector<64x128xf32>
    %14 = arith.truncf %13 : vector<64x128xf32> to vector<64x128xbf16>
    %c0_11 = arith.constant 0 : index
    %c0_12 = arith.constant 0 : index
    %15 = vector.load %arg7[%c0_11, %c0_12] : memref<64x128xbf16, #tpu.memory_space<vmem>>, vector<64x128xbf16>
    tpu.vector_store %arg7[%c0_11, %c0_12], %14 {strides = array<i32>} : memref<64x128xbf16, #tpu.memory_space<vmem>>, vector<64x128xbf16>,
    return
  }
  func.func @transform_0(%arg0: i32) -> i32 {
    %c0_i32 = arith.constant 0 : i32
    %c0_i32_0 = arith.constant 0 : i32
    return %c0_i32 : i32
  }
  func.func @transform_1(%arg0: i32) -> (i32, i32) {
    %c0_i32 = arith.constant 0 : i32
    %c0_i32_0 = arith.constant 0 : i32
    return %arg0, %c0_i32 : i32, i32
  }
  func.func @transform_2(%arg0: i32) -> (i32, i32) {
    %c0_i32 = arith.constant 0 : i32
    %c0_i32_0 = arith.constant 0 : i32
    %c0_i32_1 = arith.constant 0 : i32
    return %c0_i32, %c0_i32_0 : i32, i32
  }
  func.func @transform_3(%arg0: i32) -> (i32, i32) {
    %c0_i32 = arith.constant 0 : i32
    %c0_i32_0 = arith.constant 0 : i32
    %c0_i32_1 = arith.constant 0 : i32
    return %c0_i32, %c0_i32_0 : i32, i32
  }
  func.func @transform_4(%arg0: i32) -> (i32, i32) {
    %c0_i32 = arith.constant 0 : i32
    %c0_i32_0 = arith.constant 0 : i32
    %c0_i32_1 = arith.constant 0 : i32
    return %c0_i32, %c0_i32_0 : i32, i32
  }
  func.func @transform_5(%arg0: i32) -> (i32, i32) {
    %c0_i32 = arith.constant 0 : i32
    %c0_i32_0 = arith.constant 0 : i32
    %c0_i32_1 = arith.constant 0 : i32
    return %c0_i32, %c0_i32_0 : i32, i32
  }
  func.func @transform_6(%arg0: i32) -> (i32, i32) {
    %c0_i32 = arith.constant 0 : i32
    %c0_i32_0 = arith.constant 0 : i32
    return %arg0, %c0_i32 : i32, i32
  }
}

</mosaic_0001>

<bundles_post_ra>
// kernel: tpu_custom_call.1
= control target key start
LH: loop header
LB: loop body
LE: loop exit
PB: predicated region body
PF: predicated region fallthrough
CT: control target
= control target key end

     0   :  { %12 = vsyncpa [#allocation4], 0  ;;  %s1510_s0 = inlined_call_operand.<no memory space> [shape: s32[1], index: 0, kind: input, shape index: {}]   ;;  %s1511_s1 = inlined_call_operand.hbm [shape: bf16[128,128], index: 1, kind: input, shape index: {}]   ;;  %s1512_s2 = inlined_call_operand.hbm [shape: bf16[128,256], index: 2, kind: input, shape index: {}]   ;;  %s1513_s3 = inlined_call_operand.vmem [shape: f32[1,256], index: 3, kind: input, shape index: {}]   ;;  %s1514_s4 = inlined_call_operand.hbm [shape: bf16[256,128], index: 4, kind: input, shape index: {}]   ;;  %s1515_s5 = inlined_call_operand.vmem [shape: f32[1,128], index: 5, kind: input, shape index: {}]   ;;  %s1516_s6 = inlined_call_operand.hbm [shape: bf16[128,128], index: 6, kind: output, shape index: {}]  }
   0x1   :  { %14 = vsyncpa [#allocation4 + $0x1], 0 }
   0x2   :  { %15 = vsyncpa [#allocation7], 0 }
   0x3   :  { %16 = vsyncpa [#allocation5], 0 }
   0x4   :  { %18 = vsyncpa [#allocation5 + $0x1], 0  ;;  %s1340_s0 = smov 0   ;;  %s1342_s21 = smov 0  }
   0x5   :  { %s1344_s22 = smov 0   ;;  %s1346_s23 = smov 0  }
   0x6 LB: > { %s1361_s24 = sadd.s32 4294967295, %s1295_s23   ;;  %s838_s25 = sadd.s32 4294967294, %s1295_s23   ;;  %s1295_s23 = sphi %s1346_s23, %s1528_s23   ;;  %s1291_s22 = sphi %s1344_s22, %s1527_s22   ;;  %s1287_s21 = sphi %s1342_s21, %s1526_s21   ;;  %s1283_s0 = sphi %s1340_s0, %s1525_s0  }
   0x7   : > { %p65_p0 = scmp.ne.s32.totalorder %s1287_s21, %s1283_s0  ;;  %p66_p1 = scmp.eq.s32.totalorder %s1361_s24, 0 }
   0x8   : > { %p173_p2 = scmp.eq.s32.totalorder %s1361_s24, 1  ;;  %p179_p3 = scmp.eq.s32.totalorder %s838_s25, 1 }
   0x9   : > { %p1370_p4 = por %p66_p1, %p65_p0  ;;  %p839_p5 = scmp.ge.s32.totalorder %s1295_s23, 1 }
   0xa   : > { %p1375_p6 = por %p179_p3, %p65_p0  ;;  %p186_p7 = scmp.lt.s32.totalorder %s1295_s23, 3 }
   0xb   : > { %s200_s30 = sshll.u32 %s1512_s2, 4  ;;  %s1297_s8 = smov [#allocation6]   ;;  %s201_s30 = int_to_ptr.hbm [resolvable:$true] %s200_s30 }
   0xc   : > { %p1383_p8 = pnand %p839_p5, %p186_p7  ;;  %s202_s9 = sshll.u32 %s1297_s8, 4  ;;  %s203_s9 = int_to_ptr.vmem [resolvable:$true] %s202_s9 }
   0xd   : > { %s217_s12 = sshll.u32 %s1514_s4, 4  ;;  %s1298_s13 = smov 128   ;;  %s218_s12 = int_to_ptr.hbm [resolvable:$true] %s217_s12 }
   0xe   : > { %p1073_p9 = pneg %p1383_p8  ;;  %s1299_s14 = smov 8  }
   0xf   : > { %s1300_s15 = smov [#allocation8]   ;;  %s1517_s17 = smov 64  }
  0x10   : > { %p1074_p10 = pnand %p1073_p9, %p66_p1  ;;  %s219_s16 = sshll.u32 %s1300_s15, 4  ;;  %s220_s16 = int_to_ptr.vmem [resolvable:$true] %s219_s16 }
  0x11   : > { %s1302_s18 = smov 4   ;;  %s1399_s19 = sadd.s32 1, %s1295_s23  }
  0x12   : > { %1076 = dma.hbm_to_vmem [thread:$0]  (!%p1074_p10), %s201_s30, 2048, %s203_s9, [#allocation7], %s1298_s13, %s1298_s13, %s1299_s14  }
  0x13   : > { %1079 = dma.hbm_to_vmem [thread:$0]  (!%p1074_p10), %s218_s12, 2048, %s220_s16, [#allocation7], %s1517_s17, %s1517_s17, %s1302_s18  }
  0x14   : > { %s49_s20 = ssub.s32 %s1295_s23, %s1399_s19  ;;  %s52_s25 = sadd.s32 1, %s1291_s22 }
  0x15   : > { %p50_p12 = scmp.eq.s32.totalorder %s49_s20, 0  ;;  %p59_p13 = scmp.ne.s32.totalorder %s1291_s22, %s1287_s21 }
  0x16   : > { %p60_p0 = scmp.eq.s32.totalorder %s1295_s23, 0  ;;  %p1090_p7 = scmp.lt.s32.totalorder %s1295_s23, 2 }
  0x17   : > { %s1408_s28 = scalar_select %p50_p12, %s1291_s22, %s52_s25  }
  0x18   : > { %p61_p3 = por %p60_p0, %p59_p13  ;;  %p1412_p5 = por %p173_p2, %p59_p13 }
  0x19   : > { %s236_s30 = sand.u32 1, %s1291_s22   ;;  %s1000_s9 = sshll.u32 %s1295_s23, 5 }
  0x1a   : > { %s843_s8 = sshll.u32 %s236_s30, 5  ;;  %s245_s12 = scalar_lea.hbm %s1511_s1, %s1000_s9 }
  0x1b   : > { %s240_s13 = scalar_lea.vmem [#allocation3], %s843_s8  ;;  %s246_s15 = sshll.u32 %s245_s12, 4  ;;  %s247_s15 = int_to_ptr.hbm [resolvable:$true] %s246_s15 }
  0x1c   : > { %s248_s14 = sshll.u32 %s240_s13, 4  ;;  %p1422_p9 = pnand %p1090_p7, %p61_p3  ;;  %s249_s14 = int_to_ptr.vmem [resolvable:$true] %s248_s14 }
  0x1d   : > { %s237_s20 = scalar_lea.sflag [#allocation4], %s236_s30  ;;  %s1195_s25 = sshra.s32 %s247_s15, 4  ;;  %s1196_s25 = int_to_ptr.hbm [resolvable:$true] %s1195_s25 }
  0x1e   : > { %s1197_s17 = scalar_lea.hbm %s1196_s25, 32  ;;  %p1199_p10 = pneg %p1422_p9 }
  0x1f   : > { %p1198_p2 = scmp.ne.s32.totalorder %s1196_s25, %s1197_s17  ;;  %s1202_s10 = scalar_lea.hbm %s1511_s1, 64 }
  0x20   : > { %p1203_p0 = scmp.lt.s32.totalorder %s1196_s25, %s1511_s1  ;;  %p1204_p3 = scmp.lt.s32.totalorder %s1202_s10, %s1197_s17 }
  0x21   : > { %p1200_p12 = pnand %p1199_p10, %p1198_p2 }
  0x22   : > { %p1205_p7 = por %p1204_p3, %p1203_p0 }
  0x23   : > { %p1201_p13 = pneg %p1200_p12 }
  0x25   : > { %p1206_p11 = pnand %p1205_p7, %p1201_p13 }
  0x27   : > { %1209 = shalt.err (!%p1206_p11)
}
  0x28   : > { %s1523_s30 = smov 64   ;;  %260 = sbr.rel (%p1383_p8) target bundleno = 420 (0x1a4), region = 44 }
  0x29   : > { %1083 = dma.hbm_to_vmem [thread:$0]  (!%p1422_p9), %s247_s15, 512, %s249_s14, %s237_s20, %s1523_s30, %s1523_s30, %s1302_s18  }
  0x2a   : > { %s1442_s13 = sand.u32 (!%p1383_p8), 1, %s1287_s21  }
  0x2b   : > { %s847_s17 = sshll.u32 (!%p1383_p8), %s1442_s13, 5  ;;  %s263_s25 = scalar_lea.sflag (!%p1383_p8), [#allocation4], %s1442_s13 }
  0x2c   : > { %s1448_s9 = scalar_lea.vmem (!%p1383_p8), [#allocation3], %s847_s17 }
  0x2d   : > { %1270 = dma.done.wait (%p1370_p4), %s263_s25, 512  }
  0x2e   : > { %1272 = vsyncadd (%p1370_p4), %s263_s25, 4294966784 }
  0x2f   : > { %1274 = dma.done.wait (%p66_p1), [#allocation7], 4096  }
  0x30   : > { %1276 = vsyncadd (%p66_p1), [#allocation7], 4294963200  ;;  %v925_v0 = vld [vmem:[#allocation6 + $0x70] sm:$0xf]  ;;  %v1020_v1 = vld [vmem:[#allocation6 + $0x74] sm:$0xf0] }
  0x31   : > { %v1019_v2 = vld [vmem:[#allocation6 + $0x74] sm:$0xf]  ;;  %v926_v3 = vor.u32 %v1020_v1, %v925_v0  ;;  %v927_v4 = vld [vmem:[#allocation6 + $0x78] sm:$0xf0]  ;;  %v917_v5 = vld [vmem:[#allocation6 + $0x60] sm:$0xf] }
  0x32   : > { %v1018_v6 = vld [vmem:[#allocation6 + $0x64] sm:$0xf0]  ;;  %v930_v7 = vor.u32 %v1019_v2, %v927_v4  ;;  %v1017_v8 = vld [vmem:[#allocation6 + $0x64] sm:$0xf]  ;;  %v919_v9 = vld [vmem:[#allocation6 + $0x68] sm:$0xf0] }
  0x33   : > { %442 = vmatpush.bf16.msra.mxu0 %v926_v3  ;;  %v918_v10 = vor.u32 %v1018_v6, %v917_v5  ;;  %v922_v11 = vor.u32 %v1017_v8, %v919_v9  ;;  %v909_v12 = vld [vmem:[#allocation6 + $0x50] sm:$0xf]  ;;  %v1016_v13 = vld [vmem:[#allocation6 + $0x54] sm:$0xf0]  ;;  %v1015_v14 = vld [vmem:[#allocation6 + $0x54] sm:$0xf] }
  0x34   : > { %471 = vmatpush.bf16.msra.mxu1 %v930_v7  ;;  %v911_v15 = vld [vmem:[#allocation6 + $0x58] sm:$0xf0]  ;;  %v910_v16 = vor.u32 %v1016_v13, %v909_v12  ;;  %v901_v18 = vld [vmem:[#allocation6 + $0x40] sm:$0xf]  ;;  %v1014_v19 = vld [vmem:[#allocation6 + $0x44] sm:$0xf0] }
  0x35   : > { %v914_v17 = vor.u32 %v1015_v14, %v911_v15  ;;  %v1013_v20 = vld [vmem:[#allocation6 + $0x44] sm:$0xf]  ;;  %v903_v21 = vld [vmem:[#allocation6 + $0x48] sm:$0xf0]  ;;  %v902_v22 = vor.u32 %v1014_v19, %v901_v18  ;;  %v893_v24 = vld [vmem:[#allocation6 + $0x30] sm:$0xf] }
  0x36   : > { %v906_v23 = vor.u32 %v1013_v20, %v903_v21  ;;  %v1012_v25 = vld [vmem:[#allocation6 + $0x34] sm:$0xf0]  ;;  %v1011_v26 = vld [vmem:[#allocation6 + $0x34] sm:$0xf]  ;;  %v895_v27 = vld [vmem:[#allocation6 + $0x38] sm:$0xf0] }
  0x37   : > { %443 = vmatpush.bf16.msra.mxu0 %v918_v10  ;;  %v894_v28 = vor.u32 %v1012_v25, %v893_v24  ;;  %v898_v29 = vor.u32 %v1011_v26, %v895_v27  ;;  %v885_v30 = vld [vmem:[#allocation6 + $0x20] sm:$0xf]  ;;  %v1010_v31 = vld [vmem:[#allocation6 + $0x24] sm:$0xf0]  ;;  %v1009_v32 = vld [vmem:[#allocation6 + $0x24] sm:$0xf] }
  0x38   : > { %472 = vmatpush.bf16.msra.mxu1 %v922_v11  ;;  %v887_v33 = vld [vmem:[#allocation6 + $0x28] sm:$0xf0]  ;;  %v886_v34 = vor.u32 %v1010_v31, %v885_v30  ;;  %v877_v36 = vld [vmem:[#allocation6 + $0x10] sm:$0xf]  ;;  %v1008_v37 = vld [vmem:[#allocation6 + $0x14] sm:$0xf0] }
  0x39   : > { %v890_v35 = vor.u32 %v1009_v32, %v887_v33  ;;  %v1007_v38 = vld [vmem:[#allocation6 + $0x14] sm:$0xf]  ;;  %v879_v39 = vld [vmem:[#allocation6 + $0x18] sm:$0xf0]  ;;  %v878_v40 = vor.u32 %v1008_v37, %v877_v36  ;;  %v869_v42 = vld [vmem:[#allocation6] sm:$0xf] }
  0x3a   : > { %v882_v41 = vor.u32 %v1007_v38, %v879_v39  ;;  %v1006_v43 = vld [vmem:[#allocation6 + $0x4] sm:$0xf0]  ;;  %v1005_v44 = vld [vmem:[#allocation6 + $0x4] sm:$0xf]  ;;  %v871_v45 = vld [vmem:[#allocation6 + $0x8] sm:$0xf0] }
  0x3b   : > { %444 = vmatpush.bf16.msra.mxu0 %v910_v16  ;;  %v870_v46 = vor.u32 %v1006_v43, %v869_v42  ;;  %v874_v47 = vor.u32 %v1005_v44, %v871_v45  ;;  %v1001_v48 = vld [vmem:[%s1448_s9] sm:$0xff]  ;;  %v1002_v49 = vld [vmem:[%s1448_s9 + $0x8] sm:$0xff]  ;;  %v1028_v50 = vld [vmem:[#allocation8 + $0x38] sm:$0xff]  ;;  %s1470_s15 = scalar_lea.vmem [#allocation9], %s847_s17  ;;  %s1037_s16 = sshll.u32 %s1361_s24, 5 }
  0x3c   : > { %473 = vmatpush.bf16.msra.mxu1 %v914_v17  ;;  %v1036_v51 = vld [vmem:[#allocation8 + $0x78] sm:$0xff]  ;;  %656 = vmatpush.bf16.msra.mxu2 %v1028_v50  ;;  %v1027_v52 = vld [vmem:[#allocation8 + $0x30] sm:$0xff]  ;;  %v1026_v54 = vld [vmem:[#allocation8 + $0x28] sm:$0xff]  ;;  %s742_s10 = scalar_lea.hbm %s1516_s6, %s1037_s16  ;;  %s743_s11 = sshll.u32 %s1470_s15, 4  ;;  %s744_s11 = int_to_ptr.vmem [resolvable:$true] %s743_s11 }
  0x3d   : > { %685 = vmatpush.bf16.msra.mxu3 %v1036_v51  ;;  %v1035_v53 = vld [vmem:[#allocation8 + $0x70] sm:$0xff]  ;;  %v1034_v55 = vld [vmem:[#allocation8 + $0x68] sm:$0xff]  ;;  %v1025_v56 = vld [vmem:[#allocation8 + $0x20] sm:$0xff]  ;;  %s745_s12 = sshll.u32 %s742_s10, 4  ;;  %s731_s30 = scalar_lea.sflag [#allocation5], %s1442_s13  ;;  %s746_s12 = int_to_ptr.hbm [resolvable:$true] %s745_s12 }
  0x3e   : > { %v1033_v57 = vld [vmem:[#allocation8 + $0x60] sm:$0xff]  ;;  %v1003_v58 = vld [vmem:[%s1448_s9 + $0x10] sm:$0xff]  ;;  %v1004_v59 = vld [vmem:[%s1448_s9 + $0x18] sm:$0xff]  ;;  %s1239_s17 = sshra.s32 %s746_s12, 4  ;;  %s1245_s26 = scalar_lea.hbm %s1516_s6, 64  ;;  %s1240_s17 = int_to_ptr.hbm [resolvable:$true] %s1239_s17 }
  0x3f   : > { %445 = vmatpush.bf16.msra.mxu0 %v902_v22  ;;  %v1024_v60 = vld [vmem:[#allocation8 + $0x18] sm:$0xff]  ;;  %v1023_v62 = vld [vmem:[#allocation8 + $0x10] sm:$0xff]  ;;  %v1022_v0 = vld [vmem:[#allocation8 + $0x8] sm:$0xff]  ;;  %s1241_s24 = scalar_lea.hbm %s1240_s17, 32  ;;  %p1246_p11 = scmp.lt.s32.totalorder %s1240_s17, %s1516_s6 }
  0x40   : > { %474 = vmatpush.bf16.msra.mxu1 %v906_v23  ;;  %657 = vmatpush.bf16.msra.mxu2 %v1027_v52  ;;  %v1032_v61 = vld [vmem:[#allocation8 + $0x58] sm:$0xff]  ;;  %v1031_v63 = vld [vmem:[#allocation8 + $0x50] sm:$0xff]  ;;  %v1030_v1 = vld [vmem:[#allocation8 + $0x48] sm:$0xff]  ;;  %p1242_p1 = scmp.ne.s32.totalorder %s1240_s17, %s1241_s24  ;;  %p1247_p9 = scmp.lt.s32.totalorder %s1245_s26, %s1241_s24 }
  0x41   : > { %686 = vmatpush.bf16.msra.mxu3 %v1035_v53  ;;  %v1021_v2 = vld [vmem:[#allocation8] sm:$0xff] }
  0x42   : > { %v1029_v3 = vld [vmem:[#allocation8 + $0x40] sm:$0xff]  ;;  %p1243_p4 = pnand %p1242_p1, %p1412_p5  ;;  %p1248_p2 = por %p1247_p9, %p1246_p11 }
  0x43   : > { %446 = vmatpush.bf16.msra.mxu0 %v894_v28  ;;  %v332_v4 = vld [vmem:[%s1513_s3] sm:$0x3] }
  0x44   : > { %475 = vmatpush.bf16.msra.mxu1 %v898_v29  ;;  %658 = vmatpush.bf16.msra.mxu2 %v1026_v54  ;;  %v334_v7 = vperm.slane %v332_v4, 0  ;;  %v335_v8 = vperm.slane %v332_v4, 1  ;;  %p1244_p8 = pneg %p1243_p4 }
  0x45   : > { %687 = vmatpush.bf16.msra.mxu3 %v1034_v55 }
  0x46   : > { %p1249_p10 = pnand %p1248_p2, %p1244_p8 }
  0x47   : > { %447 = vmatpush.bf16.msra.mxu0 %v886_v34 }
  0x48   : > { %476 = vmatpush.bf16.msra.mxu1 %v890_v35  ;;  %659 = vmatpush.bf16.msra.mxu2 %v1025_v56 }
  0x49   : > { %688 = vmatpush.bf16.msra.mxu3 %v1033_v57 }
  0x4b   : > { %448 = vmatpush.bf16.msra.mxu0 %v878_v40 }
  0x4c   : > { %477 = vmatpush.bf16.msra.mxu1 %v882_v41  ;;  %660 = vmatpush.bf16.msra.mxu2 %v1024_v60 }
  0x4d   : > { %689 = vmatpush.bf16.msra.mxu3 %v1032_v61 }
  0x4f   : > { %449 = vmatpush.bf16.msra.mxu0 %v870_v46 }
  0x50   : > { %478 = vmatpush.bf16.msra.mxu1 %v874_v47  ;;  %661 = vmatpush.bf16.msra.mxu2 %v1023_v62 }
  0x51   : > { %690 = vmatpush.bf16.msra.mxu3 %v1031_v63 }
  0x52   : > { %450 = vmatmul.bf16.vlgmr.msra.gmra.mxu0 %v1001_v48 }
  0x53   : > { %479 = vmatmul.bf16.vlgmr.msra.gmra.mxu1 %v1001_v48 }
  0x54   : > { %662 = vmatpush.bf16.msra.mxu2 %v1022_v0 }
  0x55   : > { %691 = vmatpush.bf16.msra.mxu3 %v1030_v1  ;;  %v1134_v1 = vld [vmem:[%s1515_s5] ss:$0 sm:$0xff] }
  0x58   : > { %663 = vmatpush.bf16.msra.mxu2 %v1021_v2 }
  0x59   : > { %692 = vmatpush.bf16.msra.mxu3 %v1029_v3 }
  0x62   : > { %455 = vmatmul.bf16.gmra.mxu0 %v1002_v49 }
  0x63   : > { %484 = vmatmul.bf16.gmra.mxu1 %v1002_v49 }
  0x72   : > { %460 = vmatmul.bf16.gmra.mxu0 %v1003_v58 }
  0x73   : > { %489 = vmatmul.bf16.gmra.mxu1 %v1003_v58 }
  0x82   : > { %465 = vmatmul.bf16.gmra.mxu0 %v1004_v59 }
  0x83   : > { %494 = vmatmul.bf16.gmra.mxu1 %v1004_v59 }
  0xcf   : > { %v451_v5 = vpop.f32.mrf.mxu0 }
  0xd0   : > { %v480_v6 = vpop.f32.mrf.mxu1  ;;  %v452_v9 = vadd.f32 %v451_v5, %v334_v7 }
  0xd1   : > { %v481_v10 = vadd.f32 %v480_v6, %v335_v8 }
  0xd2   : > { %v500_v15 = vmax.f32 %v452_v9, 0.0 }
  0xd3   : > { %v501_v17 = vmax.f32 %v481_v10, 0.0 }
  0xd7   : > { %v453_v11 = vpop.f32.mrf.mxu0 }
  0xd8   : > { %v454_v12 = vadd.f32 %v453_v11, %v334_v7  ;;  %v482_v13 = vpop.f32.mrf.mxu1 }
  0xd9   : > { %v483_v14 = vadd.f32 %v482_v13, %v335_v8 }
  0xda   : > { %v502_v16 = vmax.f32 %v454_v12, 0.0 }
  0xdb   : > { %v503_v18 = vmax.f32 %v483_v14, 0.0 }
  0xdc   : > { %v516_v19 = vpack.c.bf16 %v502_v16, %v500_v15 }
  0xdd   : > { %v517_v20 = vpack.c.bf16 %v503_v18, %v501_v17 }
  0xde   : > { %664 = vmatmul.bf16.vlgmr.msra.gmra.mxu2 %v516_v19 }
  0xdf   : > { %693 = vmatmul.bf16.vlgmr.msra.gmra.mxu3 %v517_v20  ;;  %v456_v21 = vpop.f32.mrf.mxu0 }
  0xe0   : > { %v485_v22 = vpop.f32.mrf.mxu1  ;;  %v457_v23 = vadd.f32 %v456_v21, %v334_v7 }
  0xe1   : > { %v486_v24 = vadd.f32 %v485_v22, %v335_v8 }
  0xe2   : > { %v504_v29 = vmax.f32 %v457_v23, 0.0 }
  0xe3   : > { %v505_v31 = vmax.f32 %v486_v24, 0.0 }
  0xe7   : > { %v458_v25 = vpop.f32.mrf.mxu0 }
  0xe8   : > { %v459_v26 = vadd.f32 %v458_v25, %v334_v7  ;;  %v487_v27 = vpop.f32.mrf.mxu1 }
  0xe9   : > { %v488_v28 = vadd.f32 %v487_v27, %v335_v8 }
  0xea   : > { %v506_v30 = vmax.f32 %v459_v26, 0.0 }
  0xeb   : > { %v507_v32 = vmax.f32 %v488_v28, 0.0 }
  0xec   : > { %v518_v33 = vpack.c.bf16 %v506_v30, %v504_v29 }
  0xed   : > { %v519_v34 = vpack.c.bf16 %v507_v32, %v505_v31 }
  0xee   : > { %669 = vmatmul.bf16.gmra.mxu2 %v518_v33 }
  0xef   : > { %698 = vmatmul.bf16.gmra.mxu3 %v519_v34  ;;  %v461_v35 = vpop.f32.mrf.mxu0 }
  0xf0   : > { %v490_v36 = vpop.f32.mrf.mxu1  ;;  %v462_v37 = vadd.f32 %v461_v35, %v334_v7 }
  0xf1   : > { %v491_v38 = vadd.f32 %v490_v36, %v335_v8 }
  0xf2   : > { %v508_v43 = vmax.f32 %v462_v37, 0.0 }
  0xf3   : > { %v509_v45 = vmax.f32 %v491_v38, 0.0 }
  0xf7   : > { %v463_v39 = vpop.f32.mrf.mxu0 }
  0xf8   : > { %v464_v40 = vadd.f32 %v463_v39, %v334_v7  ;;  %v492_v41 = vpop.f32.mrf.mxu1 }
  0xf9   : > { %v493_v42 = vadd.f32 %v492_v41, %v335_v8 }
  0xfa   : > { %v510_v44 = vmax.f32 %v464_v40, 0.0 }
  0xfb   : > { %v511_v46 = vmax.f32 %v493_v42, 0.0 }
  0xfc   : > { %v520_v47 = vpack.c.bf16 %v510_v44, %v508_v43 }
  0xfd   : > { %v521_v48 = vpack.c.bf16 %v511_v46, %v509_v45 }
  0xfe   : > { %674 = vmatmul.bf16.gmra.mxu2 %v520_v47 }
  0xff   : > { %703 = vmatmul.bf16.gmra.mxu3 %v521_v48  ;;  %v466_v49 = vpop.f32.mrf.mxu0 }
 0x100   : > { %v495_v50 = vpop.f32.mrf.mxu1  ;;  %v467_v51 = vadd.f32 %v466_v49, %v334_v7 }
 0x101   : > { %v496_v52 = vadd.f32 %v495_v50, %v335_v8 }
 0x102   : > { %v512_v57 = vmax.f32 %v467_v51, 0.0 }
 0x103   : > { %v513_v59 = vmax.f32 %v496_v52, 0.0 }
 0x107   : > { %v468_v53 = vpop.f32.mrf.mxu0 }
 0x108   : > { %v469_v54 = vadd.f32 %v468_v53, %v334_v7  ;;  %v497_v55 = vpop.f32.mrf.mxu1 }
 0x109   : > { %v498_v56 = vadd.f32 %v497_v55, %v335_v8 }
 0x10a   : > { %v514_v58 = vmax.f32 %v469_v54, 0.0 }
 0x10b   : > { %v515_v60 = vmax.f32 %v498_v56, 0.0 }
 0x10c   : > { %v522_v61 = vpack.c.bf16 %v514_v58, %v512_v57 }
 0x10d   : > { %v523_v62 = vpack.c.bf16 %v515_v60, %v513_v59 }
 0x10e   : > { %679 = vmatmul.bf16.gmra.mxu2 %v522_v61 }
 0x10f   : > { %708 = vmatmul.bf16.gmra.mxu3 %v523_v62 }
 0x161   : > { %v665_v63 = vpop.f32.mrf.mxu2 }
 0x162   : > { %v694_v0 = vpop.f32.mrf.mxu3  ;;  %v666_v2 = vadd.f32 %v1134_v1, %v665_v63 }
 0x164   : > { %v695_v6 = vadd.f32 %v694_v0, %v666_v2 }
 0x169   : > { %v667_v3 = vpop.f32.mrf.mxu2 }
 0x16a   : > { %v668_v4 = vadd.f32 %v1134_v1, %v667_v3  ;;  %v696_v5 = vpop.f32.mrf.mxu3 }
 0x16c   : > { %v697_v7 = vadd.f32 %v696_v5, %v668_v4 }
 0x16e   : > { %v1041_v8 = vpack.c.bf16 %v697_v7, %v695_v6 }
 0x170   : > { %1042 = vst [vmem:[%s1470_s15] sm:$0xff] %v1041_v8  }
 0x171   : > { %v670_v9 = vpop.f32.mrf.mxu2 }
 0x172   : > { %v699_v10 = vpop.f32.mrf.mxu3  ;;  %v671_v11 = vadd.f32 %v1134_v1, %v670_v9 }
 0x174   : > { %v700_v15 = vadd.f32 %v699_v10, %v671_v11 }
 0x179   : > { %v672_v12 = vpop.f32.mrf.mxu2 }
 0x17a   : > { %v673_v13 = vadd.f32 %v1134_v1, %v672_v12  ;;  %v701_v14 = vpop.f32.mrf.mxu3 }
 0x17c   : > { %v702_v16 = vadd.f32 %v701_v14, %v673_v13 }
 0x17e   : > { %v1046_v17 = vpack.c.bf16 %v702_v16, %v700_v15 }
 0x180   : > { %1058 = vst [vmem:[%s1470_s15 + $0x8] sm:$0xff] %v1046_v17  }
 0x181   : > { %v675_v18 = vpop.f32.mrf.mxu2 }
 0x182   : > { %v704_v19 = vpop.f32.mrf.mxu3  ;;  %v676_v20 = vadd.f32 %v1134_v1, %v675_v18 }
 0x184   : > { %v705_v24 = vadd.f32 %v704_v19, %v676_v20 }
 0x189   : > { %v677_v21 = vpop.f32.mrf.mxu2 }
 0x18a   : > { %v678_v22 = vadd.f32 %v1134_v1, %v677_v21  ;;  %v706_v23 = vpop.f32.mrf.mxu3 }
 0x18c   : > { %v707_v25 = vadd.f32 %v706_v23, %v678_v22 }
 0x18e   : > { %v1051_v26 = vpack.c.bf16 %v707_v25, %v705_v24 }
 0x190   : > { %1059 = vst [vmem:[%s1470_s15 + $0x10] sm:$0xff] %v1051_v26  }
 0x191   : > { %v680_v27 = vpop.f32.mrf.mxu2 }
 0x192   : > { %v709_v28 = vpop.f32.mrf.mxu3  ;;  %v681_v29 = vadd.f32 %v1134_v1, %v680_v27 }
 0x194   : > { %v710_v33 = vadd.f32 %v709_v28, %v681_v29 }
 0x199   : > { %v682_v30 = vpop.f32.mrf.mxu2 }
 0x19a   : > { %v683_v31 = vadd.f32 %v1134_v1, %v682_v30  ;;  %v711_v32 = vpop.f32.mrf.mxu3 }
 0x19c   : > { %v712_v34 = vadd.f32 %v711_v32, %v683_v31 }
 0x19e   : > { %v1056_v35 = vpack.c.bf16 %v712_v34, %v710_v33 }
 0x1a0   : > { %1060 = vst [vmem:[%s1470_s15 + $0x18] sm:$0xff] %v1056_v35  }
 0x1a1   : > { %1252 = shalt.err (!%p1249_p10)
}
 0x1a2   : > { %s1303_s13 = smov 64   ;;  %s1304_s14 = smov 4  }
 0x1a3   : > { %1071 = dma.vmem_to_hbm [thread:$0]  (%p1412_p5), %s744_s11, 512, %s746_s12, %s731_s30, %s1303_s13, %s1303_s13, %s1304_s14  }
 0x1a4 PF: > { %s760_s15 = sand.u32 1, %s1283_s0   ;;  %p1524_p12 = scmp.ge.s32.totalorder %s1295_s23, 2 }
 0x1a5   : > { %s761_s16 = scalar_lea.sflag [#allocation5], %s760_s15 }
 0x1a6   : > { %p1085_p13 = pnand %p1524_p12, %p1375_p6 }
 0x1a8   : > { %p1086_p0 = pneg %p1085_p13 }
 0x1aa   : > { %1278 = dma.done.wait (%p1086_p0), %s761_s16, 512  }
 0x1ab   : > { %1280 = vsyncadd (%p1086_p0), %s761_s16, 4294966784  ;;  %p21_p3 = scmp.ge.s32.totalorder %s1399_s19, 4   ;;  %s1525_s0 = smov %s1287_s21 }
 0x1ac   : > { %s1526_s21 = smov %s1291_s22  ;;  %s1527_s22 = smov %s1408_s28 }
 0x1ad   : > { %s1528_s23 = smov %s1399_s19  ;;  %23 = sbr.rel (!%p21_p3) target bundleno = 6 (0x6), region = 97 }
 0x1b2   :  { %767 = vsyncpa [#allocation4], 1 }
 0x1b3   :  { %769 = vsyncpa [#allocation4 + $0x1], 1 }
 0x1b4   :  { %770 = vsyncpa [#allocation7], 1 }
 0x1b5   :  { %771 = vsyncpa [#allocation5], 1 }
 0x1b6   :  { %773 = vsyncpa [#allocation5 + $0x1], 1 }

</bundles_post_ra>
